<compile_context>
chip_gen: v6e
topology: v6e:2x2x1
jax: 0.10.0
libtpu: 0.0.40
codegen_flags: <defaults>
</compile_context>

<pallas_src>
import jax
import jax.numpy as jnp
from jax.experimental import pallas as pl
from jax.experimental.pallas import tpu as pltpu

LANE = 128
SUBLANE = 8


def _round_up(x, m):
    return ((x + m - 1) // m) * m


# ---------------------------------------------------------------------------
# Fused kernel: relu(x@W1+b1) -> relu(.@W2+b2) -> .@W3+b3 -> max_action * tanh
# ---------------------------------------------------------------------------
def actor_fused_kernel(ma_ref, x_ref,
                       w1_ref, b1_ref, w2_ref, b2_ref, w3_ref, b3_ref,
                       out_ref):
    max_action = ma_ref[0, 0]            # SMEM scalar (no recompile per max_action value)
    cdt = w1_ref.dtype                   # operand/compute dtype (bf16 or f32)

    h = jnp.dot(x_ref[...], w1_ref[...],
                preferred_element_type=jnp.float32) + b1_ref[...]
    h = jnp.maximum(h, 0.0).astype(cdt)

    h = jnp.dot(h, w2_ref[...],
                preferred_element_type=jnp.float32) + b2_ref[...]
    h = jnp.maximum(h, 0.0).astype(cdt)

    a = jnp.dot(h, w3_ref[...],
                preferred_element_type=jnp.float32) + b3_ref[...]
    out_ref[...] = (max_action * jnp.tanh(a)).astype(out_ref.dtype)


# ---------------------------------------------------------------------------
# One-time parameter preparation (hoisted out of the per-step call path)
# ---------------------------------------------------------------------------
def prepare_actor_params(params, param_dtype=jnp.bfloat16):
    """Pad each layer to its own lane-dense width and cast weights ONCE (at init time)."""
    w1, b1, w2, b2, w3, b3 = params
    obs_dim, hidden = w1.shape
    act_dim = w3.shape[1]
    obs_pad = _round_up(obs_dim, LANE)
    hid_pad = _round_up(hidden, LANE)
    act_pad = _round_up(act_dim, LANE)

    def pad_w(w, rows, cols):
        out = jnp.zeros((rows, cols), param_dtype)
        return out.at[: w.shape[0], : w.shape[1]].set(w.astype(param_dtype))

    def pad_b(b, cols):
        b = jnp.asarray(b, jnp.float32).reshape(1, -1)   # biases stay f32 (tiny, added post-MXU)
        out = jnp.zeros((1, cols), jnp.float32)
        return out.at[:, : b.shape[1]].set(b)

    padded = dict(
        w1=pad_w(w1, obs_pad, hid_pad), b1=pad_b(b1, hid_pad),
        w2=pad_w(w2, hid_pad, hid_pad), b2=pad_b(b2, hid_pad),
        w3=pad_w(w3, hid_pad, act_pad), b3=pad_b(b3, act_pad),
    )
    dims = dict(obs_dim=obs_dim, hidden=hidden, act_dim=act_dim,
                obs_pad=obs_pad, hid_pad=hid_pad, act_pad=act_pad)
    return padded, dims


# ---------------------------------------------------------------------------
# Per-call apply (jitted by make_actor)
# ---------------------------------------------------------------------------
def _actor_apply(obs, ma, w1, b1, w2, b2, w3, b3, *, dims, tile_b_cap):
    batch, obs_dim = obs.shape
    assert obs_dim == dims["obs_dim"], "obs feature dim mismatch with prepared params"
    obs_pad, hid_pad, act_pad = dims["obs_pad"], dims["hid_pad"], dims["act_pad"]
    cdt = w1.dtype
    itemsize = jnp.dtype(cdt).itemsize

    # Batch: pad only to a sublane multiple of 8 (Pallas masks a ragged last tile).
    b_pad = _round_up(max(batch, 1), SUBLANE)
    tile_b = min(_round_up(tile_b_cap, SUBLANE), b_pad)   # large tiles; grid >= 2 for big batches
    grid = (pl.cdiv(b_pad, tile_b),)

    x = jnp.pad(obs.astype(cdt), ((0, b_pad - batch), (0, obs_pad - obs_dim)))

    # VMEM budget: single-buffered weights/biases + double-buffered obs/out tiles + f32 intermediates.
    w_bytes = (obs_pad * hid_pad + hid_pad * hid_pad + hid_pad * act_pad) * itemsize
    bias_bytes = (2 * hid_pad + act_pad) * 4
    io_bytes = 2 * tile_b * (obs_pad + act_pad) * itemsize
    scratch_bytes = 2 * tile_b * hid_pad * 4
    vmem_limit = int(min(64 << 20,
                         max(32 << 20, 2 * (w_bytes + bias_bytes + io_bytes + scratch_bytes))))

    flops = 2 * b_pad * (obs_pad * hid_pad + hid_pad * hid_pad + hid_pad * act_pad)
    transcendentals = b_pad * act_pad
    bytes_accessed = b_pad * (obs_pad + act_pad) * itemsize + w_bytes + bias_bytes

    def resident_spec(shape):
        # Constant block index -> fetched once; single-buffered to halve resident VMEM.
        return pl.BlockSpec(shape, lambda i: (0, 0), pipeline_mode=pl.Buffered(1))

    out_padded = pl.pallas_call(
        actor_fused_kernel,
        out_shape=jax.ShapeDtypeStruct((b_pad, act_pad), cdt),
        grid=grid,
        in_specs=[
            pl.BlockSpec(memory_space=pltpu.MemorySpace.SMEM),    # max_action scalar
            pl.BlockSpec((tile_b, obs_pad), lambda i: (i, 0)),    # obs tile (pipelined)
            resident_spec((obs_pad, hid_pad)),                    # W1
            resident_spec((1, hid_pad)),                          # b1
            resident_spec((hid_pad, hid_pad)),                    # W2
            resident_spec((1, hid_pad)),                          # b2
            resident_spec((hid_pad, act_pad)),                    # W3
            resident_spec((1, act_pad)),                          # b3
        ],
        out_specs=pl.BlockSpec((tile_b, act_pad), lambda i: (i, 0)),
        compiler_params=pltpu.CompilerParams(
            dimension_semantics=("parallel",),
            vmem_limit_bytes=vmem_limit,
        ),
        cost_estimate=pl.CostEstimate(
            flops=int(flops),
            transcendentals=int(transcendentals),
            bytes_accessed=int(bytes_accessed),
        ),
    )(ma, x, w1, b1, w2, b2, w3, b3)

    # Slice the padded batch rows and padded action lanes back off.
    return out_padded[:batch, : dims["act_dim"]]


def make_actor(params, *, max_action=1.0, param_dtype=jnp.bfloat16, tile_b_cap=1024):
    """Build Actor.forward.  Parameter padding/casting happens here, ONCE."""
    padded, dims = prepare_actor_params(params, param_dtype)
    ma = jnp.full((1, 1), max_action, dtype=jnp.float32)

    @jax.jit
    def _fwd(obs, ma, w1, b1, w2, b2, w3, b3):
        return _actor_apply(obs, ma, w1, b1, w2, b2, w3, b3,
                            dims=dims, tile_b_cap=tile_b_cap)

    def forward(obs, state=None):
        action = _fwd(obs, ma, padded["w1"], padded["b1"],
                      padded["w2"], padded["b2"], padded["w3"], padded["b3"])
        return action, state

    return forward


# ---------------------------------------------------------------------------
# Pure-JAX reference & init
# ---------------------------------------------------------------------------
def actor_reference(obs, params, *, max_action=1.0):
    w1, b1, w2, b2, w3, b3 = params
    h = jnp.maximum(obs @ w1 + b1, 0.0)
    h = jnp.maximum(h @ w2 + b2, 0.0)
    return max_action * jnp.tanh(h @ w3 + b3)


def init_params(key, obs_dim, hidden_dim, act_dim):
    """Deterministic PyTorch-Linear-style uniform init (bound = 1/sqrt(fan_in))."""
    ks = jax.random.split(key, 6)

    def lin(kw, kb, fan_in, fan_out):
        bound = 1.0 / jnp.sqrt(jnp.float32(fan_in))
        w = jax.random.uniform(kw, (fan_in, fan_out), jnp.float32, -bound, bound)
        b = jax.random.uniform(kb, (1, fan_out), jnp.float32, -bound, bound)
        return w, b

    w1, b1 = lin(ks[0], ks[1], obs_dim, hidden_dim)
    w2, b2 = lin(ks[2], ks[3], hidden_dim, hidden_dim)
    w3, b3 = lin(ks[4], ks[5], hidden_dim, act_dim)
    return (w1, b1, w2, b2, w3, b3)


if __name__ == "__main__":
    BATCH, OBS_DIM, HIDDEN, ACT_DIM = 8, 16, 32, 4
    MAX_ACTION = 1.0

    key = jax.random.PRNGKey(0)
    k_obs, k_par = jax.random.split(key)

    obs = jax.random.normal(k_obs, (BATCH, OBS_DIM), dtype=jnp.float32)
    params = init_params(k_par, OBS_DIM, HIDDEN, ACT_DIM)
    ref = actor_reference(obs, params, max_action=MAX_ACTION)

    # f32 operand path: exact-ish check.
    actor_f32 = make_actor(params, max_action=MAX_ACTION, param_dtype=jnp.float32)
    act_f32, st = actor_f32(obs, state=None)
    act_f32 = jax.block_until_ready(act_f32)
    assert act_f32.shape == (BATCH, ACT_DIM)
    assert st is None
    assert jnp.allclose(act_f32.astype(jnp.float32), ref, atol=1e-3, rtol=1e-3), \
        "Pallas f32 output mismatch vs reference"

    # Default bf16-operand / f32-accumulation path: looser tolerance vs the f32 reference.
    actor_bf16 = make_actor(params, max_action=MAX_ACTION)
    act_bf16, _ = actor_bf16(obs)
    act_bf16 = jax.block_until_ready(act_bf16)
    assert act_bf16.shape == (BATCH, ACT_DIM)
    assert jnp.allclose(act_bf16.astype(jnp.float32), ref, atol=5e-2, rtol=5e-2), \
        "Pallas bf16 output mismatch vs reference"

    print("KERNEL_OK")
</pallas_src>

<mosaic_0001>
module attributes {stable_mosaic.version = 11 : i64} {
  func.func @actor_fused_kernel(%arg0: i32, %arg1: memref<1x1xf32, #tpu.memory_space<smem>>, %arg2: memref<8x128xf32, #tpu.memory_space<vmem>>, %arg3: memref<128x128xf32, #tpu.memory_space<vmem>>, %arg4: memref<1x128xf32, #tpu.memory_space<vmem>>, %arg5: memref<128x128xf32, #tpu.memory_space<vmem>>, %arg6: memref<1x128xf32, #tpu.memory_space<vmem>>, %arg7: memref<128x128xf32, #tpu.memory_space<vmem>>, %arg8: memref<1x128xf32, #tpu.memory_space<vmem>>, %arg9: memref<8x128xf32, #tpu.memory_space<vmem>>) attributes {dimension_semantics = [#tpu.dimension_semantics<parallel>], iteration_bounds = array<i64: 1>, scalar_prefetch = 0 : i64, scratch_operands = 0 : i64, tpu.core_type = #tpu.core_type<tc>, window_params = [{transform_indices = @transform_0, window_bounds = array<i64: 1, 1>}, {transform_indices = @transform_1, window_bounds = array<i64: 8, 128>}, {pipeline_mode = #tpu.pipeline_mode<synchronous>, transform_indices = @transform_2, window_bounds = array<i64: 128, 128>}, {pipeline_mode = #tpu.pipeline_mode<synchronous>, transform_indices = @transform_3, window_bounds = array<i64: 1, 128>}, {pipeline_mode = #tpu.pipeline_mode<synchronous>, transform_indices = @transform_4, window_bounds = array<i64: 128, 128>}, {pipeline_mode = #tpu.pipeline_mode<synchronous>, transform_indices = @transform_5, window_bounds = array<i64: 1, 128>}, {pipeline_mode = #tpu.pipeline_mode<synchronous>, transform_indices = @transform_6, window_bounds = array<i64: 128, 128>}, {pipeline_mode = #tpu.pipeline_mode<synchronous>, transform_indices = @transform_7, window_bounds = array<i64: 1, 128>}, {transform_indices = @transform_8, window_bounds = array<i64: 8, 128>}]} {
    %c0 = arith.constant 0 : index
    %c0_0 = arith.constant 0 : index
    %0 = memref.load %arg1[%c0, %c0_0] : memref<1x1xf32, #tpu.memory_space<smem>>
    %c0_1 = arith.constant 0 : index
    %c0_2 = arith.constant 0 : index
    %1 = vector.load %arg2[%c0_1, %c0_2] : memref<8x128xf32, #tpu.memory_space<vmem>>, vector<8x128xf32>
    %c0_3 = arith.constant 0 : index
    %c0_4 = arith.constant 0 : index
    %2 = vector.load %arg3[%c0_3, %c0_4] : memref<128x128xf32, #tpu.memory_space<vmem>>, vector<128x128xf32>
    %cst = arith.constant dense<0.000000e+00> : vector<8x128xf32>
    %3 = tpu.matmul %1, %2, %cst {dimension_numbers = #tpu.dot_dimension_numbers<[1], [0], [0], [1], [0, 0, 1, 1], [], []>} : vector<8x128xf32>, vector<128x128xf32>, vector<8x128xf32> -> vector<8x128xf32>
    %c0_5 = arith.constant 0 : index
    %c0_6 = arith.constant 0 : index
    %4 = vector.load %arg4[%c0_5, %c0_6] : memref<1x128xf32, #tpu.memory_space<vmem>>, vector<1x128xf32>
    %5 = vector.broadcast %4 : vector<1x128xf32> to vector<8x128xf32>
    %6 = arith.addf %3, %5 : vector<8x128xf32>
    %cst_7 = arith.constant 0.000000e+00 : f32
    %7 = vector.broadcast %cst_7 : f32 to vector<8x128xf32>
    %8 = arith.maximumf %6, %7 : vector<8x128xf32>
    %c0_8 = arith.constant 0 : index
    %c0_9 = arith.constant 0 : index
    %9 = vector.load %arg5[%c0_8, %c0_9] : memref<128x128xf32, #tpu.memory_space<vmem>>, vector<128x128xf32>
    %cst_10 = arith.constant dense<0.000000e+00> : vector<8x128xf32>
    %10 = tpu.matmul %8, %9, %cst_10 {dimension_numbers = #tpu.dot_dimension_numbers<[1], [0], [0], [1], [0, 0, 1, 1], [], []>} : vector<8x128xf32>, vector<128x128xf32>, vector<8x128xf32> -> vector<8x128xf32>
    %c0_11 = arith.constant 0 : index
    %c0_12 = arith.constant 0 : index
    %11 = vector.load %arg6[%c0_11, %c0_12] : memref<1x128xf32, #tpu.memory_space<vmem>>, vector<1x128xf32>
    %12 = vector.broadcast %11 : vector<1x128xf32> to vector<8x128xf32>
    %13 = arith.addf %10, %12 : vector<8x128xf32>
    %cst_13 = arith.constant 0.000000e+00 : f32
    %14 = vector.broadcast %cst_13 : f32 to vector<8x128xf32>
    %15 = arith.maximumf %13, %14 : vector<8x128xf32>
    %c0_14 = arith.constant 0 : index
    %c0_15 = arith.constant 0 : index
    %16 = vector.load %arg7[%c0_14, %c0_15] : memref<128x128xf32, #tpu.memory_space<vmem>>, vector<128x128xf32>
    %cst_16 = arith.constant dense<0.000000e+00> : vector<8x128xf32>
    %17 = tpu.matmul %15, %16, %cst_16 {dimension_numbers = #tpu.dot_dimension_numbers<[1], [0], [0], [1], [0, 0, 1, 1], [], []>} : vector<8x128xf32>, vector<128x128xf32>, vector<8x128xf32> -> vector<8x128xf32>
    %c0_17 = arith.constant 0 : index
    %c0_18 = arith.constant 0 : index
    %18 = vector.load %arg8[%c0_17, %c0_18] : memref<1x128xf32, #tpu.memory_space<vmem>>, vector<1x128xf32>
    %19 = vector.broadcast %18 : vector<1x128xf32> to vector<8x128xf32>
    %20 = arith.addf %17, %19 : vector<8x128xf32>
    %21 = math.tanh %20 : vector<8x128xf32>
    %22 = vector.broadcast %0 : f32 to vector<8x128xf32>
    %23 = arith.mulf %22, %21 : vector<8x128xf32>
    %c0_19 = arith.constant 0 : index
    %c0_20 = arith.constant 0 : index
    %24 = vector.load %arg9[%c0_19, %c0_20] : memref<8x128xf32, #tpu.memory_space<vmem>>, vector<8x128xf32>
    tpu.vector_store %arg9[%c0_19, %c0_20], %23 {strides = array<i32>} : memref<8x128xf32, #tpu.memory_space<vmem>>, vector<8x128xf32>,
    return
  }
  func.func @transform_0(%arg0: i32) -> (i32, i32) {
    %c0_i32 = arith.constant 0 : i32
    %c0_i32_0 = arith.constant 0 : i32
    %c0_i32_1 = arith.constant 0 : i32
    return %c0_i32, %c0_i32_0 : i32, i32
  }
  func.func @transform_1(%arg0: i32) -> (i32, i32) {
    %c0_i32 = arith.constant 0 : i32
    %c0_i32_0 = arith.constant 0 : i32
    return %arg0, %c0_i32 : i32, i32
  }
  func.func @transform_2(%arg0: i32) -> (i32, i32) {
    %c0_i32 = arith.constant 0 : i32
    %c0_i32_0 = arith.constant 0 : i32
    %c0_i32_1 = arith.constant 0 : i32
    return %c0_i32, %c0_i32_0 : i32, i32
  }
  func.func @transform_3(%arg0: i32) -> (i32, i32) {
    %c0_i32 = arith.constant 0 : i32
    %c0_i32_0 = arith.constant 0 : i32
    %c0_i32_1 = arith.constant 0 : i32
    return %c0_i32, %c0_i32_0 : i32, i32
  }
  func.func @transform_4(%arg0: i32) -> (i32, i32) {
    %c0_i32 = arith.constant 0 : i32
    %c0_i32_0 = arith.constant 0 : i32
    %c0_i32_1 = arith.constant 0 : i32
    return %c0_i32, %c0_i32_0 : i32, i32
  }
  func.func @transform_5(%arg0: i32) -> (i32, i32) {
    %c0_i32 = arith.constant 0 : i32
    %c0_i32_0 = arith.constant 0 : i32
    %c0_i32_1 = arith.constant 0 : i32
    return %c0_i32, %c0_i32_0 : i32, i32
  }
  func.func @transform_6(%arg0: i32) -> (i32, i32) {
    %c0_i32 = arith.constant 0 : i32
    %c0_i32_0 = arith.constant 0 : i32
    %c0_i32_1 = arith.constant 0 : i32
    return %c0_i32, %c0_i32_0 : i32, i32
  }
  func.func @transform_7(%arg0: i32) -> (i32, i32) {
    %c0_i32 = arith.constant 0 : i32
    %c0_i32_0 = arith.constant 0 : i32
    %c0_i32_1 = arith.constant 0 : i32
    return %c0_i32, %c0_i32_0 : i32, i32
  }
  func.func @transform_8(%arg0: i32) -> (i32, i32) {
    %c0_i32 = arith.constant 0 : i32
    %c0_i32_0 = arith.constant 0 : i32
    return %arg0, %c0_i32 : i32, i32
  }
}

</mosaic_0001>

<bundles_post_ra>
// kernel: _fwd.1
= control target key start
LH: loop header
LB: loop body
LE: loop exit
PB: predicated region body
PF: predicated region fallthrough
CT: control target
= control target key end

     0   :  { %14 = vsyncpa [#allocation4], 0  ;;  %s729_s0 = inlined_call_operand.<no memory space> [shape: f32[1,1], index: 0, kind: input, shape index: {}]   ;;  %s730_s1 = inlined_call_operand.vmem [shape: f32[8,128], index: 1, kind: input, shape index: {}]   ;;  %s731_s2 = inlined_call_operand.hbm [shape: f32[128,128], index: 2, kind: input, shape index: {}]   ;;  %s732_s3 = inlined_call_operand.vmem [shape: f32[1,128], index: 3, kind: input, shape index: {}]   ;;  %s733_s4 = inlined_call_operand.hbm [shape: f32[128,128], index: 4, kind: input, shape index: {}]   ;;  %s734_s5 = inlined_call_operand.vmem [shape: f32[1,128], index: 5, kind: input, shape index: {}]   ;;  %s735_s6 = inlined_call_operand.hbm [shape: f32[128,128], index: 6, kind: input, shape index: {}]   ;;  %s736_s7 = inlined_call_operand.vmem [shape: f32[1,128], index: 7, kind: input, shape index: {}]   ;;  %s737_s8 = inlined_call_operand.vmem [shape: f32[8,128], index: 8, kind: output, shape index: {}]  }
   0x1   :  { %15 = vsyncpa [#allocation6], 0  ;;  %s596_s27 = smov [#allocation5]   ;;  %s597_s29 = smov [#allocation3]  }
   0x2   :  { %s39_s28 = sshll.u32 %s596_s27, 4  ;;  %s25_s30 = sshll.u32 %s597_s29, 4  ;;  %s40_s28 = int_to_ptr.vmem [resolvable:$true] %s39_s28  ;;  %s26_s30 = int_to_ptr.vmem [resolvable:$true] %s25_s30 }
   0x3   :  { %s540_s9 = scalar_lea.vmem %s40_s28, 2048  ;;  %p545_p1 = scmp.lt.s32.totalorder %s40_s28, %s40_s28 }
   0x4   :  { %p541_p0 = scmp.ne.s32.totalorder %s40_s28, %s540_s9  ;;  %p546_p2 = scmp.lt.s32.totalorder %s540_s9, %s540_s9 }
   0x6   :  { %p547_p3 = por %p546_p2, %p545_p1 }
   0x8   :  { %p548_p4 = pnand %p547_p3, %p541_p0 }
   0xa   :  { %551 = shalt.err (!%p548_p4)
}
   0xb   :  { %s598_s10 = smov 128   ;;  %s599_s11 = smov 8  }
   0xc   :  { %45 = dma.hbm_to_vmem [thread:$0]  %s733_s4, 2048, %s40_s28, [#allocation6], %s598_s10, %s598_s10, %s599_s11  }
   0xd   :  { %s560_s14 = scalar_lea.vmem %s26_s30, 2048  ;;  %p565_p6 = scmp.lt.s32.totalorder %s26_s30, %s26_s30 }
   0xe   :  { %p561_p5 = scmp.ne.s32.totalorder %s26_s30, %s560_s14  ;;  %p566_p7 = scmp.lt.s32.totalorder %s560_s14, %s560_s14 }
  0x10   :  { %p567_p8 = por %p566_p7, %p565_p6 }
  0x12   :  { %p568_p9 = pnand %p567_p8, %p561_p5 }
  0x14   :  { %571 = shalt.err (!%p568_p9)
}
  0x15   :  { %31 = dma.hbm_to_vmem [thread:$0]  %s731_s2, 2048, %s26_s30, [#allocation4], %s598_s10, %s598_s10, %s599_s11  }
  0x16   :  { %s600_s17 = smov [#allocation7]  }
  0x17   :  { %s53_s18 = sshll.u32 %s600_s17, 4  ;;  %s54_s18 = int_to_ptr.vmem [resolvable:$true] %s53_s18 }
  0x18   :  { %s580_s19 = scalar_lea.vmem %s54_s18, 2048  ;;  %p585_p11 = scmp.lt.s32.totalorder %s54_s18, %s54_s18 }
  0x19   :  { %p581_p10 = scmp.ne.s32.totalorder %s54_s18, %s580_s19  ;;  %p586_p12 = scmp.lt.s32.totalorder %s580_s19, %s580_s19 }
  0x1b   :  { %p587_p13 = por %p586_p12, %p585_p11 }
  0x1d   :  { %p588_p0 = pnand %p587_p13, %p581_p10 }
  0x1f   :  { %591 = shalt.err (!%p588_p0)
}
  0x20   :  { %59 = dma.hbm_to_vmem [thread:$0]  %s735_s6, 2048, %s54_s18, [#allocation6], %s598_s10, %s598_s10, %s599_s11  }
  0x21   :  { %592 = dma.done.wait [#allocation4], 2048  }
  0x22   :  { %593 = vsyncadd [#allocation4], 4294965248 }
  0x23   :  { %594 = dma.done.wait [#allocation6], 4096  }
  0x24   :  { %595 = vsyncadd [#allocation6], 4294963200  ;;  %v601_v0 = vmov 0.0   ;;  %vm602_vm0 = vmmov 0   ;;  %v88_v1 = vld [vmem:[#allocation3 + $0x78] sm:$0xff]  ;;  %v87_v2 = vld [vmem:[#allocation3 + $0x70] sm:$0xff] }
  0x25   :  { %418 = vmatprep.subr.mxu0 %v601_v0  ;;  %450 = vmatprep.mubr.msk.f32.mxu0 %vm602_vm0, %v601_v0  ;;  %v86_v3 = vld [vmem:[#allocation3 + $0x68] sm:$0xff]  ;;  %v85_v4 = vld [vmem:[#allocation3 + $0x60] sm:$0xff]  ;;  %v182_v5 = vld [vmem:[#allocation5 + $0x78] sm:$0xff] }
  0x26   :  { %453 = vmatprep.subr.mxu1 %v601_v0  ;;  %485 = vmatprep.mubr.msk.f32.mxu1 %vm602_vm0, %v601_v0  ;;  %v84_v6 = vld [vmem:[#allocation3 + $0x58] sm:$0xff]  ;;  %v181_v7 = vld [vmem:[#allocation5 + $0x70] sm:$0xff]  ;;  %v180_v8 = vld [vmem:[#allocation5 + $0x68] sm:$0xff] }
  0x27   :  { %419 = vmatpush3.msra.mxu0 %v88_v1  ;;  %454 = vmatpush3.msra.mxu1 %v182_v5  ;;  %v83_v9 = vld [vmem:[#allocation3 + $0x50] sm:$0xff]  ;;  %v179_v10 = vld [vmem:[#allocation5 + $0x60] sm:$0xff]  ;;  %v82_v11 = vld [vmem:[#allocation3 + $0x48] sm:$0xff] }
  0x28   :  { %420 = vmatprep.subr.mxu0 %v601_v0  ;;  %455 = vmatprep.subr.mxu1 %v601_v0  ;;  %v178_v12 = vld [vmem:[#allocation5 + $0x58] sm:$0xff]  ;;  %v81_v13 = vld [vmem:[#allocation3 + $0x40] sm:$0xff]  ;;  %v177_v14 = vld [vmem:[#allocation5 + $0x50] sm:$0xff] }
  0x29   :  { %421 = vmatpush3.msra.mxu0 %v87_v2  ;;  %456 = vmatpush3.msra.mxu1 %v181_v7  ;;  %v80_v15 = vld [vmem:[#allocation3 + $0x38] sm:$0xff]  ;;  %v176_v16 = vld [vmem:[#allocation5 + $0x48] sm:$0xff]  ;;  %v79_v17 = vld [vmem:[#allocation3 + $0x30] sm:$0xff] }
  0x2a   :  { %422 = vmatprep.subr.mxu0 %v601_v0  ;;  %457 = vmatprep.subr.mxu1 %v601_v0  ;;  %v175_v18 = vld [vmem:[#allocation5 + $0x40] sm:$0xff]  ;;  %v78_v19 = vld [vmem:[#allocation3 + $0x28] sm:$0xff]  ;;  %v174_v20 = vld [vmem:[#allocation5 + $0x38] sm:$0xff] }
  0x2b   :  { %423 = vmatpush3.msra.mxu0 %v86_v3  ;;  %458 = vmatpush3.msra.mxu1 %v180_v8  ;;  %v77_v21 = vld [vmem:[#allocation3 + $0x20] sm:$0xff]  ;;  %v173_v22 = vld [vmem:[#allocation5 + $0x30] sm:$0xff]  ;;  %v76_v23 = vld [vmem:[#allocation3 + $0x18] sm:$0xff] }
  0x2c   :  { %424 = vmatprep.subr.mxu0 %v601_v0  ;;  %459 = vmatprep.subr.mxu1 %v601_v0  ;;  %v172_v24 = vld [vmem:[#allocation5 + $0x28] sm:$0xff]  ;;  %v75_v25 = vld [vmem:[#allocation3 + $0x10] sm:$0xff]  ;;  %v171_v26 = vld [vmem:[#allocation5 + $0x20] sm:$0xff] }
  0x2d   :  { %425 = vmatpush3.msra.mxu0 %v85_v4  ;;  %460 = vmatpush3.msra.mxu1 %v179_v10  ;;  %v74_v27 = vld [vmem:[#allocation3 + $0x8] sm:$0xff]  ;;  %v170_v28 = vld [vmem:[#allocation5 + $0x18] sm:$0xff]  ;;  %v73_v29 = vld [vmem:[#allocation3] sm:$0xff] }
  0x2e   :  { %426 = vmatprep.subr.mxu0 %v601_v0  ;;  %461 = vmatprep.subr.mxu1 %v601_v0  ;;  %v72_v30 = vld [vmem:[%s730_s1] sm:$0xff]  ;;  %v169_v31 = vld [vmem:[#allocation5 + $0x10] sm:$0xff]  ;;  %v168_v32 = vld [vmem:[#allocation5 + $0x8] sm:$0xff] }
  0x2f   :  { %427 = vmatpush3.msra.mxu0 %v84_v6  ;;  %462 = vmatpush3.msra.mxu1 %v178_v12  ;;  %v167_v33 = vld [vmem:[#allocation5] sm:$0xff]  ;;  %v276_v34 = vld [vmem:[#allocation7 + $0x78] sm:$0xff]  ;;  %v275_v35 = vld [vmem:[#allocation7 + $0x70] sm:$0xff] }
  0x30   :  { %428 = vmatprep.subr.mxu0 %v601_v0  ;;  %463 = vmatprep.subr.mxu1 %v601_v0  ;;  %v274_v36 = vld [vmem:[#allocation7 + $0x68] sm:$0xff]  ;;  %v273_v37 = vld [vmem:[#allocation7 + $0x60] sm:$0xff]  ;;  %v272_v38 = vld [vmem:[#allocation7 + $0x58] sm:$0xff] }
  0x31   :  { %429 = vmatpush3.msra.mxu0 %v83_v9  ;;  %464 = vmatpush3.msra.mxu1 %v177_v14  ;;  %v271_v39 = vld [vmem:[#allocation7 + $0x50] sm:$0xff]  ;;  %v270_v40 = vld [vmem:[#allocation7 + $0x48] sm:$0xff]  ;;  %v269_v41 = vld [vmem:[#allocation7 + $0x40] sm:$0xff] }
  0x32   :  { %430 = vmatprep.subr.mxu0 %v601_v0  ;;  %465 = vmatprep.subr.mxu1 %v601_v0  ;;  %v268_v42 = vld [vmem:[#allocation7 + $0x38] sm:$0xff]  ;;  %v267_v43 = vld [vmem:[#allocation7 + $0x30] sm:$0xff]  ;;  %v266_v44 = vld [vmem:[#allocation7 + $0x28] sm:$0xff] }
  0x33   :  { %431 = vmatpush3.msra.mxu0 %v82_v11  ;;  %466 = vmatpush3.msra.mxu1 %v176_v16  ;;  %v265_v45 = vld [vmem:[#allocation7 + $0x20] sm:$0xff]  ;;  %v264_v46 = vld [vmem:[#allocation7 + $0x18] sm:$0xff]  ;;  %v263_v52 = vld [vmem:[#allocation7 + $0x10] sm:$0xff] }
  0x34   :  { %432 = vmatprep.subr.mxu0 %v601_v0  ;;  %467 = vmatprep.subr.mxu1 %v601_v0  ;;  %v364_v47 = vld [vmem:[%s732_s3] ss:$0 sm:$0xff]  ;;  %v262_v53 = vld [vmem:[#allocation7 + $0x8] sm:$0xff] }
  0x35   :  { %433 = vmatpush3.msra.mxu0 %v81_v13  ;;  %468 = vmatpush3.msra.mxu1 %v175_v18  ;;  %v261_v54 = vld [vmem:[#allocation7] sm:$0xff] }
  0x36   :  { %434 = vmatprep.subr.mxu0 %v601_v0  ;;  %469 = vmatprep.subr.mxu1 %v601_v0  ;;  %v365_v55 = vld [vmem:[%s734_s5] ss:$0 sm:$0xff] }
  0x37   :  { %435 = vmatpush3.msra.mxu0 %v80_v15  ;;  %470 = vmatpush3.msra.mxu1 %v174_v20  ;;  %v366_v60 = vld [vmem:[%s736_s7] ss:$0 sm:$0xff] }
  0x38   :  { %436 = vmatprep.subr.mxu0 %v601_v0  ;;  %471 = vmatprep.subr.mxu1 %v601_v0 }
  0x39   :  { %437 = vmatpush3.msra.mxu0 %v79_v17  ;;  %472 = vmatpush3.msra.mxu1 %v173_v22 }
  0x3a   :  { %438 = vmatprep.subr.mxu0 %v601_v0  ;;  %473 = vmatprep.subr.mxu1 %v601_v0 }
  0x3b   :  { %439 = vmatpush3.msra.mxu0 %v78_v19  ;;  %474 = vmatpush3.msra.mxu1 %v172_v24 }
  0x3c   :  { %440 = vmatprep.subr.mxu0 %v601_v0  ;;  %475 = vmatprep.subr.mxu1 %v601_v0 }
  0x3d   :  { %441 = vmatpush3.msra.mxu0 %v77_v21  ;;  %476 = vmatpush3.msra.mxu1 %v171_v26 }
  0x3e   :  { %442 = vmatprep.subr.mxu0 %v601_v0  ;;  %477 = vmatprep.subr.mxu1 %v601_v0 }
  0x3f   :  { %443 = vmatpush3.msra.mxu0 %v76_v23  ;;  %478 = vmatpush3.msra.mxu1 %v170_v28 }
  0x40   :  { %444 = vmatprep.subr.mxu0 %v601_v0  ;;  %479 = vmatprep.subr.mxu1 %v601_v0 }
  0x41   :  { %445 = vmatpush3.msra.mxu0 %v75_v25  ;;  %480 = vmatpush3.msra.mxu1 %v169_v31 }
  0x42   :  { %446 = vmatprep.subr.mxu0 %v601_v0  ;;  %481 = vmatprep.subr.mxu1 %v601_v0 }
  0x43   :  { %447 = vmatpush3.msra.mxu0 %v74_v27  ;;  %482 = vmatpush3.msra.mxu1 %v168_v32 }
  0x44   :  { %448 = vmatprep.subr.mxu0 %v601_v0  ;;  %483 = vmatprep.subr.mxu1 %v601_v0 }
  0x45   :  { %449 = vmatpush3.msra.mxu0 %v73_v29  ;;  %484 = vmatpush3.msra.mxu1 %v167_v33 }
  0x46   :  { %451 = vmatmul.mubr.f32.vlgmr.msra.gmra.mxu0 %v72_v30  ;;  %488 = vmatprep.subr.mxu0 %v601_v0 }
  0x47   :  { %520 = vmatprep.mubr.msk.f32.mxu0 %vm602_vm0, %v601_v0  ;;  %489 = vmatpush3.msra.mxu0 %v276_v34 }
  0x48   :  { %490 = vmatprep.subr.mxu0 %v601_v0 }
  0x49   :  { %491 = vmatpush3.msra.mxu0 %v275_v35 }
  0x4a   :  { %492 = vmatprep.subr.mxu0 %v601_v0 }
  0x4b   :  { %493 = vmatpush3.msra.mxu0 %v274_v36 }
  0x4c   :  { %494 = vmatprep.subr.mxu0 %v601_v0 }
  0x4d   :  { %495 = vmatpush3.msra.mxu0 %v273_v37 }
  0x4e   :  { %496 = vmatprep.subr.mxu0 %v601_v0 }
  0x4f   :  { %497 = vmatpush3.msra.mxu0 %v272_v38 }
  0x50   :  { %498 = vmatprep.subr.mxu0 %v601_v0 }
  0x51   :  { %499 = vmatpush3.msra.mxu0 %v271_v39 }
  0x52   :  { %500 = vmatprep.subr.mxu0 %v601_v0 }
  0x53   :  { %501 = vmatpush3.msra.mxu0 %v270_v40 }
  0x54   :  { %502 = vmatprep.subr.mxu0 %v601_v0 }
  0x55   :  { %503 = vmatpush3.msra.mxu0 %v269_v41 }
  0x56   :  { %504 = vmatprep.subr.mxu0 %v601_v0 }
  0x57   :  { %505 = vmatpush3.msra.mxu0 %v268_v42 }
  0x58   :  { %506 = vmatprep.subr.mxu0 %v601_v0 }
  0x59   :  { %507 = vmatpush3.msra.mxu0 %v267_v43 }
  0x5a   :  { %508 = vmatprep.subr.mxu0 %v601_v0 }
  0x5b   :  { %509 = vmatpush3.msra.mxu0 %v266_v44 }
  0x5c   :  { %510 = vmatprep.subr.mxu0 %v601_v0 }
  0x5d   :  { %511 = vmatpush3.msra.mxu0 %v265_v45 }
  0x5e   :  { %512 = vmatprep.subr.mxu0 %v601_v0 }
  0x5f   :  { %513 = vmatpush3.msra.mxu0 %v264_v46 }
  0x60   :  { %514 = vmatprep.subr.mxu0 %v601_v0 }
  0x61   :  { %515 = vmatpush3.msra.mxu0 %v263_v52 }
  0x62   :  { %516 = vmatprep.subr.mxu0 %v601_v0 }
  0x63   :  { %517 = vmatpush3.msra.mxu0 %v262_v53 }
  0x64   :  { %518 = vmatprep.subr.mxu0 %v601_v0  ;;  %v355_v0 = vstv %s729_s0 }
  0x65   :  { %519 = vmatpush3.msra.mxu0 %v261_v54 }
 0x106   :  { %v162_v48 = vpop.f32.mrf.mxu0 }
 0x107   :  { %v163_v49 = vadd.f32 %v364_v47, %v162_v48 }
 0x108   :  { %v452_v50 = vpop.f32.mrf.mxu0 }
 0x109   :  { %v166_v51 = vmax.f32 %v163_v49, 0.0 }
 0x10b   :  { %486 = vmatmul.mubr.f32.vlgmr.msra.gmra.mxu1 %v166_v51 }
 0x1cb   :  { %v256_v56 = vpop.f32.mrf.mxu1 }
 0x1cc   :  { %v257_v57 = vadd.f32 %v365_v55, %v256_v56 }
 0x1cd   :  { %v487_v58 = vpop.f32.mrf.mxu1 }
 0x1ce   :  { %v260_v59 = vmax.f32 %v257_v57, 0.0 }
 0x1d0   :  { %521 = vmatmul.mubr.f32.vlgmr.msra.gmra.mxu0 %v260_v59 }
 0x290   :  { %v350_v61 = vpop.f32.mrf.mxu0 }
 0x291   :  { %v351_v62 = vadd.f32 %v366_v60, %v350_v61 }
 0x292   :  { %v522_v63 = vpop.f32.mrf.mxu0 }
 0x293   :  { %530 = vtanh.f32 %v351_v62 }
 0x2a0   :  { %v531_v1 = vpop.eup %530 }
 0x2a1   :  { %v356_v2 = vmul.f32 %v531_v1, %v355_v0 }
 0x2a3   :  { %357 = vst [vmem:[%s737_s8] sm:$0xff] %v356_v2 }
 0x2a4   :  { %362 = vsyncpa [#allocation4], 1 }
 0x2a5   :  { %363 = vsyncpa [#allocation6], 1 }

</bundles_post_ra>
